<compile_context>
chip_gen: v7x
topology: tpu7x:2x2x1
jax: 0.10.0
libtpu: 0.0.40
codegen_flags: <defaults>
</compile_context>

<pallas_src>
import functools

import jax
import jax.numpy as jnp
from jax.experimental import pallas as pl
from jax.experimental.pallas import tpu as pltpu


def _flash_mha_kernel(q_ref, k_ref, v_ref, o_ref, m_ref, l_ref, acc_ref, *,
                      scale, compute_dtype, softmax_dtype):
    """One (batch*kv_head, q-tile) block, iterated over kv tiles (grid axis 2).

    q_ref : (1, rep, tq, D)   -- all `rep` q heads sharing this K/V head
    k_ref : (1, tkv, D)        v_ref : (1, tkv, D)
    o_ref : (1, rep, tq, D)
    m_ref / l_ref : (rep*tq, 1) f32 scratch, acc_ref : (rep*tq, D) f32 scratch
    """
    kv_idx = pl.program_id(2)

    @pl.when(kv_idx == 0)
    def _init():
        m_ref[...] = jnp.full_like(m_ref, -jnp.inf)
        l_ref[...] = jnp.zeros_like(l_ref)
        acc_ref[...] = jnp.zeros_like(acc_ref)

    rep, tq, d = q_ref.shape[1], q_ref.shape[2], q_ref.shape[3]
    rows = rep * tq

    # Scale in the input dtype (fp32 precision for fp32 inputs), then cast to
    # the MXU compute dtype.  (rep, tq, D) -> (rep*tq, D) only merges leading
    # sublane-major dims, so it is a layout no-op.
    q = (q_ref[0] * scale).reshape(rows, d).astype(compute_dtype)
    k = k_ref[0].astype(compute_dtype)                        # (tkv, D)
    v = v_ref[0].astype(compute_dtype)                        # (tkv, D)

    # scores = q @ k^T without an explicit transpose: contract the last dims.
    s = jax.lax.dot_general(
        q, k, dimension_numbers=(((1,), (1,)), ((), ())),
        preferred_element_type=jnp.float32)                   # (rows, tkv) f32

    m_prev = m_ref[...]                                       # (rows, 1)
    m_new = jnp.maximum(m_prev, jnp.max(s, axis=-1, keepdims=True))
    alpha = jnp.exp(m_prev - m_new)                           # (rows, 1) f32
    # exp over the big (rows, tkv) tensor: bf16 on v6e/v7x (bf16 EUP doubles
    # throughput and removes one cast pass), f32 on v5e and older chips.
    p = jnp.exp((s - m_new).astype(softmax_dtype))            # (rows, tkv)

    l_ref[...] = alpha * l_ref[...] + jnp.sum(
        p, axis=-1, keepdims=True, dtype=jnp.float32)
    acc_ref[...] = alpha * acc_ref[...] + jnp.dot(
        p.astype(compute_dtype), v, preferred_element_type=jnp.float32)
    m_ref[...] = m_new

    @pl.when(kv_idx == pl.num_programs(2) - 1)
    def _finalize():
        # Exact divide: runs once per q tile, so the approximate EUP
        # reciprocal would save nothing and cost accuracy.
        out = (acc_ref[...] / l_ref[...]).astype(o_ref.dtype)
        o_ref[0] = out.reshape(rep, tq, d)


def _pick_tile(n, preferred, granule):
    """Largest divisor of n <= preferred that is a multiple of `granule`
    (lane/sublane friendly); falls back to any divisor, then to n itself."""
    if n <= preferred:
        return n
    best_any = None
    for t in range(preferred, 0, -1):
        if n % t:
            continue
        if t % granule == 0:
            return t
        if best_any is None:
            best_any = t
    return best_any if best_any is not None else n


def _device_kind():
    try:
        return jax.devices()[0].device_kind.lower()
    except Exception:
        return ""


def _vmem_capacity_bytes():
    try:
        return int(pltpu.get_tpu_info().vmem_capacity_bytes)
    except Exception:
        return 64 * 1024 * 1024        # conservative (v7x per-core VMEM)


def multi_head_attention(query, key, value, *, num_heads, head_size, scale,
                         num_kv_heads=None, q_tile=None, kv_tile=None,
                         compute_dtype=jnp.bfloat16, softmax_dtype=None):
    """Forward pass of vLLM MultiHeadAttention.

    query: (B, Lq, num_heads * head_size)
    key/value: (B, Lkv, num_kv_heads * head_size)
    returns: (B, Lq, num_heads * head_size)
    """
    if num_kv_heads is None:
        num_kv_heads = num_heads
    assert num_heads % num_kv_heads == 0
    rep = num_heads // num_kv_heads

    bsz, q_len, _ = query.shape
    kv_len = key.shape[1]
    dtype = query.dtype
    in_itemsize = jnp.dtype(dtype).itemsize
    cmp_itemsize = jnp.dtype(compute_dtype).itemsize

    kind = _device_kind()
    is_old_gen = any(t in kind for t in
                     ("v2", "v3", "v4", "v5 lite", "v5e", "v5lite"))
    if softmax_dtype is None:
        if is_old_gen or jnp.dtype(compute_dtype) == jnp.dtype(jnp.float32):
            softmax_dtype = jnp.float32      # no bf16 EUP/VPU on v5e & older
        else:
            softmax_dtype = jnp.bfloat16

    # ---------------- tile selection (VMEM-budgeted) ------------------------
    vmem_cap = _vmem_capacity_bytes()
    budget = max(int(0.45 * vmem_cap), 8 * 1024 * 1024)

    # K/V residency: with tkv = kv_len the K/V block index is constant across
    # the q-tile axis (and across the `rep` q heads of a group), so Pallas
    # skips the re-DMA and K/V are read from HBM once per (batch, kv_head).
    kv_resident_bytes = 2 * 2 * kv_len * head_size * in_itemsize   # K+V, 2 bufs
    if kv_tile is None:
        if kv_resident_bytes <= budget // 3:
            tkv = kv_len
        else:
            tkv = _pick_tile(kv_len, preferred=2048, granule=128)
    else:
        tkv = kv_tile
    assert kv_len % tkv == 0, "kv_tile must divide kv_len"
    kv_resident = (tkv == kv_len)
    num_kv_steps = kv_len // tkv

    # Generation-aware q tile when K/V must be streamed from HBM (roofline:
    # inner-loop AI ~ tq flops/byte in bf16): v6e needs ~768, v7x ~384, v5e ~256.
    if kv_resident:
        pref_tq = 512
    elif "v6" in kind:
        pref_tq = 768
    elif "7x" in kind or "v7" in kind:
        pref_tq = 384
    elif "v5" in kind:
        pref_tq = 256
    else:
        pref_tq = 512
    q_granule = 16 if cmp_itemsize == 2 else 8

    if q_tile is None:
        tq = _pick_tile(q_len, preferred=pref_tq, granule=q_granule)
    else:
        tq = q_tile
    assert q_len % tq == 0, "q_tile must divide q_len"

    def _step_vmem(tq_):
        rows_ = rep * tq_
        n_kv_buf = 2 if kv_resident else 3
        b = 2 * rows_ * head_size * in_itemsize              # Q (double buffer)
        b += 2 * rows_ * head_size * in_itemsize             # O (double buffer)
        b += 2 * n_kv_buf * tkv * head_size * in_itemsize    # K + V buffers
        b += rows_ * (2 * 4 + head_size * 4)                 # m, l, acc scratch
        b += rows_ * tkv * (4 + jnp.dtype(softmax_dtype).itemsize + cmp_itemsize)
        b += (rows_ + 2 * tkv) * head_size * cmp_itemsize    # casted tiles
        return b

    if q_tile is None:
        while _step_vmem(tq) > budget:
            smaller = _pick_tile(q_len, preferred=tq // 2, granule=q_granule)
            if smaller >= tq:
                break
            tq = smaller

    rows = rep * tq
    grid = (bsz * num_kv_heads, q_len // tq, num_kv_steps)

    # -------- layout: (B, L, H*D) -> (B*H_kv, rep, L, D) --------------------
    # TODO(synk): have the upstream QKV projections emit this layout directly
    # (or fuse the transpose into the pallas_call input DMA via
    # allow_input_fusion); kept here so the public interface matches PyTorch.
    q = query.reshape(bsz, q_len, num_kv_heads, rep, head_size)
    q = q.transpose(0, 2, 3, 1, 4).reshape(bsz * num_kv_heads, rep, q_len,
                                           head_size)
    k = key.reshape(bsz, kv_len, num_kv_heads, head_size).transpose(0, 2, 1, 3)
    k = k.reshape(bsz * num_kv_heads, kv_len, head_size)
    v = value.reshape(bsz, kv_len, num_kv_heads, head_size).transpose(0, 2, 1, 3)
    v = v.reshape(bsz * num_kv_heads, kv_len, head_size)

    kernel = functools.partial(
        _flash_mha_kernel, scale=float(scale),
        compute_dtype=jnp.dtype(compute_dtype),
        softmax_dtype=jnp.dtype(softmax_dtype))

    # -------- specs ----------------------------------------------------------
    q_spec = pl.BlockSpec((1, rep, tq, head_size),
                          lambda b, qi, ki: (b, 0, qi, 0))
    o_spec = pl.BlockSpec((1, rep, tq, head_size),
                          lambda b, qi, ki: (b, 0, qi, 0))
    kv_index = lambda b, qi, ki: (b, ki, 0)
    if num_kv_steps > 1:
        # Streamed K/V: triple-buffer the DMA so it stays hidden behind the
        # relatively small per-step compute.
        k_spec = pl.BlockSpec((1, tkv, head_size), kv_index,
                              pipeline_mode=pl.Buffered(3))
        v_spec = pl.BlockSpec((1, tkv, head_size), kv_index,
                              pipeline_mode=pl.Buffered(3))
    else:
        k_spec = pl.BlockSpec((1, tkv, head_size), kv_index)
        v_spec = pl.BlockSpec((1, tkv, head_size), kv_index)

    # -------- cost estimate (includes the K/V re-read factor) ---------------
    q_elems = bsz * num_heads * q_len * head_size
    kv_elems = bsz * num_kv_heads * kv_len * head_size
    kv_reread = 1 if kv_resident else (q_len // tq)
    cost = pl.CostEstimate(
        flops=int(4 * bsz * num_heads * q_len * kv_len * head_size),
        transcendentals=int(bsz * num_heads * q_len * kv_len),
        bytes_accessed=int(2 * q_elems * in_itemsize
                           + 2 * kv_elems * in_itemsize * kv_reread),
    )

    cp_kwargs = dict(dimension_semantics=("parallel", "parallel", "arbitrary"))
    est = _step_vmem(tq)
    default_scoped = 32 * 1024 * 1024
    if est > int(0.8 * default_scoped):
        # Re-budget against physical VMEM (64 MiB on v7x, 128 MiB on v5e/v6e).
        cp_kwargs["vmem_limit_bytes"] = int(min(0.9 * vmem_cap,
                                                max(default_scoped, 1.25 * est)))

    out = pl.pallas_call(
        kernel,
        out_shape=jax.ShapeDtypeStruct(
            (bsz * num_kv_heads, rep, q_len, head_size), dtype),
        grid_spec=pltpu.PrefetchScalarGridSpec(
            num_scalar_prefetch=0,
            grid=grid,
            in_specs=[q_spec, k_spec, v_spec],
            out_specs=o_spec,
            scratch_shapes=[
                pltpu.VMEM((rows, 1), jnp.float32),           # running max m
                pltpu.VMEM((rows, 1), jnp.float32),           # running sum l
                pltpu.VMEM((rows, head_size), jnp.float32),   # output acc
            ],
        ),
        compiler_params=pltpu.CompilerParams(**cp_kwargs),
        cost_estimate=cost,
    )(q, k, v)

    # (B*H_kv, rep, Lq, D) -> (B, Lq, H*D)
    out = out.reshape(bsz, num_kv_heads, rep, q_len, head_size)
    out = out.transpose(0, 3, 1, 2, 4)
    return out.reshape(bsz, q_len, num_heads * head_size)


def _reference_attention(query, key, value, *, num_heads, head_size, scale,
                         num_kv_heads=None):
    if num_kv_heads is None:
        num_kv_heads = num_heads
    bsz, q_len, _ = query.shape
    kv_len = key.shape[1]
    q = query.reshape(bsz, q_len, num_heads, head_size)
    k = key.reshape(bsz, kv_len, num_kv_heads, head_size)
    v = value.reshape(bsz, kv_len, num_kv_heads, head_size)
    if num_kv_heads != num_heads:
        repf = num_heads // num_kv_heads
        k = jnp.repeat(k, repf, axis=2)
        v = jnp.repeat(v, repf, axis=2)
    s = jnp.einsum("bqhd,bkhd->bhqk",
                   q.astype(jnp.float32), k.astype(jnp.float32)) * scale
    p = jax.nn.softmax(s, axis=-1)
    o = jnp.einsum("bhqk,bkhd->bqhd", p, v.astype(jnp.float32))
    return o.reshape(bsz, q_len, num_heads * head_size).astype(query.dtype)


if __name__ == "__main__":
    rng = jax.random.PRNGKey(0)
    # The kernel uses bf16 MXU matmuls (and bf16 softmax on v6e/v7x), so the
    # tolerance vs the fp32 reference is a few 1e-2; real bugs show up as
    # O(0.1+) errors.
    TOL = 3e-2

    # --- Case 1: tiny MHA config (module-default-ish), fp32 inputs ----------
    num_heads, head_size = 2, 16
    hidden = num_heads * head_size
    bsz, q_len, kv_len = 2, 8, 8
    scale = head_size ** -0.5
    kq, kk, kv_, rng = jax.random.split(rng, 4)
    query = jax.random.normal(kq, (bsz, q_len, hidden), dtype=jnp.float32)
    key_t = jax.random.normal(kk, (bsz, kv_len, hidden), dtype=jnp.float32)
    value = jax.random.normal(kv_, (bsz, kv_len, hidden), dtype=jnp.float32)
    out = jax.block_until_ready(multi_head_attention(
        query, key_t, value, num_heads=num_heads, head_size=head_size,
        scale=scale))
    ref = _reference_attention(query, key_t, value, num_heads=num_heads,
                               head_size=head_size, scale=scale)
    assert out.shape == (bsz, q_len, hidden)
    assert jnp.allclose(out, ref, atol=TOL, rtol=TOL), "case1 mismatch"

    # --- Case 2: GQA with resident K/V (single kv tile, grouped heads) ------
    num_heads, num_kv_heads, head_size = 4, 2, 64
    bsz, q_len, kv_len = 2, 256, 384
    scale = head_size ** -0.5
    kq, kk, kv_, rng = jax.random.split(rng, 4)
    query = jax.random.normal(kq, (bsz, q_len, num_heads * head_size),
                              dtype=jnp.float32)
    key_t = jax.random.normal(kk, (bsz, kv_len, num_kv_heads * head_size),
                              dtype=jnp.float32)
    value = jax.random.normal(kv_, (bsz, kv_len, num_kv_heads * head_size),
                              dtype=jnp.float32)
    out = jax.block_until_ready(multi_head_attention(
        query, key_t, value, num_heads=num_heads, head_size=head_size,
        scale=scale, num_kv_heads=num_kv_heads))
    ref = _reference_attention(query, key_t, value, num_heads=num_heads,
                               head_size=head_size, scale=scale,
                               num_kv_heads=num_kv_heads)
    assert out.shape == (bsz, q_len, num_heads * head_size)
    assert jnp.allclose(out, ref, atol=TOL, rtol=TOL), "case2 mismatch"

    # --- Case 3: streamed K/V (multi kv-tile online softmax + Buffered(3)),
    #             bf16 inputs ------------------------------------------------
    num_heads, head_size = 2, 64
    bsz, q_len, kv_len = 1, 128, 512
    scale = head_size ** -0.5
    kq, kk, kv_, rng = jax.random.split(rng, 4)
    query = jax.random.normal(kq, (bsz, q_len, num_heads * head_size),
                              dtype=jnp.bfloat16)
    key_t = jax.random.normal(kk, (bsz, kv_len, num_heads * head_size),
                              dtype=jnp.bfloat16)
    value = jax.random.normal(kv_, (bsz, kv_len, num_heads * head_size),
                              dtype=jnp.bfloat16)
    out = jax.block_until_ready(multi_head_attention(
        query, key_t, value, num_heads=num_heads, head_size=head_size,
        scale=scale, kv_tile=128))
    ref = _reference_attention(query, key_t, value, num_heads=num_heads,
                               head_size=head_size, scale=scale)
    assert out.shape == (bsz, q_len, num_heads * head_size)
    assert jnp.allclose(out.astype(jnp.float32), ref.astype(jnp.float32),
                        atol=TOL, rtol=TOL), "case3 mismatch"

    print("KERNEL_OK")
</pallas_src>

<mosaic_0001>
module attributes {stable_mosaic.version = 11 : i64} {
  func.func @_flash_mha_kernel(%arg0: i32, %arg1: i32, %arg2: i32, %arg3: memref<1x1x8x16xf32, #tpu.memory_space<vmem>>, %arg4: memref<1x8x16xf32, #tpu.memory_space<vmem>>, %arg5: memref<1x8x16xf32, #tpu.memory_space<vmem>>, %arg6: memref<1x1x8x16xf32, #tpu.memory_space<vmem>>, %arg7: memref<8x1xf32, #tpu.memory_space<vmem>>, %arg8: memref<8x1xf32, #tpu.memory_space<vmem>>, %arg9: memref<8x16xf32, #tpu.memory_space<vmem>>) attributes {dimension_semantics = [#tpu.dimension_semantics<parallel>, #tpu.dimension_semantics<parallel>, #tpu.dimension_semantics<arbitrary>], iteration_bounds = array<i64: 4, 1, 1>, scalar_prefetch = 0 : i64, scratch_operands = 3 : i64, tpu.core_type = #tpu.core_type<tc>, window_params = [{transform_indices = @transform_0, window_bounds = array<i64: 1, 1, 8, 16>}, {transform_indices = @transform_1, window_bounds = array<i64: 1, 8, 16>}, {transform_indices = @transform_2, window_bounds = array<i64: 1, 8, 16>}, {transform_indices = @transform_3, window_bounds = array<i64: 1, 1, 8, 16>}]} {
    %c0_i32 = arith.constant 0 : i32
    %0 = arith.cmpi eq, %arg2, %c0_i32 : i32
    %1 = arith.extui %0 : i1 to i32
    %c0_i32_0 = arith.constant 0 : i32
    %2 = arith.cmpi ne, %1, %c0_i32_0 : i32
    scf.if %2 {
      %cst_28 = arith.constant 0xFF800000 : f32
      %43 = vector.broadcast %cst_28 : f32 to vector<8x1xf32>
      %c0_29 = arith.constant 0 : index
      %c0_30 = arith.constant 0 : index
      %44 = vector.load %arg7[%c0_29, %c0_30] : memref<8x1xf32, #tpu.memory_space<vmem>>, vector<8x1xf32>
      tpu.vector_store %arg7[%c0_29, %c0_30], %43 {strides = array<i32>} : memref<8x1xf32, #tpu.memory_space<vmem>>, vector<8x1xf32>,
      %cst_31 = arith.constant 0.000000e+00 : f32
      %45 = vector.broadcast %cst_31 : f32 to vector<8x1xf32>
      %c0_32 = arith.constant 0 : index
      %c0_33 = arith.constant 0 : index
      %46 = vector.load %arg8[%c0_32, %c0_33] : memref<8x1xf32, #tpu.memory_space<vmem>>, vector<8x1xf32>
      tpu.vector_store %arg8[%c0_32, %c0_33], %45 {strides = array<i32>} : memref<8x1xf32, #tpu.memory_space<vmem>>, vector<8x1xf32>,
      %cst_34 = arith.constant 0.000000e+00 : f32
      %47 = vector.broadcast %cst_34 : f32 to vector<8x16xf32>
      %c0_35 = arith.constant 0 : index
      %c0_36 = arith.constant 0 : index
      %48 = vector.load %arg9[%c0_35, %c0_36] : memref<8x16xf32, #tpu.memory_space<vmem>>, vector<8x16xf32>
      tpu.vector_store %arg9[%c0_35, %c0_36], %47 {strides = array<i32>} : memref<8x16xf32, #tpu.memory_space<vmem>>, vector<8x16xf32>,
    } else {
    }
    %c0 = arith.constant 0 : index
    %c0_1 = arith.constant 0 : index
    %c0_2 = arith.constant 0 : index
    %c0_3 = arith.constant 0 : index
    %3 = vector.load %arg3[%c0, %c0_1, %c0_2, %c0_3] : memref<1x1x8x16xf32, #tpu.memory_space<vmem>>, vector<1x1x8x16xf32>
    %4 = vector.shape_cast %3 : vector<1x1x8x16xf32> to vector<1x8x16xf32>
    %cst = arith.constant 2.500000e-01 : f32
    %5 = vector.broadcast %cst : f32 to vector<1x8x16xf32>
    %6 = arith.mulf %4, %5 : vector<1x8x16xf32>
    %7 = vector.shape_cast %6 : vector<1x8x16xf32> to vector<8x16xf32>
    %8 = arith.truncf %7 : vector<8x16xf32> to vector<8x16xbf16>
    %c0_4 = arith.constant 0 : index
    %c0_5 = arith.constant 0 : index
    %c0_6 = arith.constant 0 : index
    %9 = vector.load %arg4[%c0_4, %c0_5, %c0_6] : memref<1x8x16xf32, #tpu.memory_space<vmem>>, vector<1x8x16xf32>
    %10 = vector.shape_cast %9 : vector<1x8x16xf32> to vector<8x16xf32>
    %11 = arith.truncf %10 : vector<8x16xf32> to vector<8x16xbf16>
    %c0_7 = arith.constant 0 : index
    %c0_8 = arith.constant 0 : index
    %c0_9 = arith.constant 0 : index
    %12 = vector.load %arg5[%c0_7, %c0_8, %c0_9] : memref<1x8x16xf32, #tpu.memory_space<vmem>>, vector<1x8x16xf32>
    %13 = vector.shape_cast %12 : vector<1x8x16xf32> to vector<8x16xf32>
    %14 = arith.truncf %13 : vector<8x16xf32> to vector<8x16xbf16>
    %cst_10 = arith.constant dense<0.000000e+00> : vector<8x8xf32>
    %15 = tpu.matmul %8, %11, %cst_10 {dimension_numbers = #tpu.dot_dimension_numbers<[1], [1], [0], [0], [0, 0, 1, 0], [], []>} : vector<8x16xbf16>, vector<8x16xbf16>, vector<8x8xf32> -> vector<8x8xf32>
    %c0_11 = arith.constant 0 : index
    %c0_12 = arith.constant 0 : index
    %16 = vector.load %arg7[%c0_11, %c0_12] : memref<8x1xf32, #tpu.memory_space<vmem>>, vector<8x1xf32>
    %cst_13 = arith.constant dense<0xFF800000> : vector<8xf32>
    %17 = vector.multi_reduction <maximumf>, %15, %cst_13 [1] : vector<8x8xf32> to vector<8xf32>
    %18 = vector.shape_cast %17 : vector<8xf32> to vector<8x1xf32>
    %19 = arith.maximumf %16, %18 : vector<8x1xf32>
    %20 = arith.subf %16, %19 : vector<8x1xf32>
    %21 = math.exp %20 : vector<8x1xf32>
    %22 = vector.broadcast %19 : vector<8x1xf32> to vector<8x8xf32>
    %23 = arith.subf %15, %22 : vector<8x8xf32>
    %24 = arith.truncf %23 : vector<8x8xf32> to vector<8x8xbf16>
    %25 = math.exp %24 : vector<8x8xbf16>
    %c0_14 = arith.constant 0 : index
    %c0_15 = arith.constant 0 : index
    %26 = vector.load %arg8[%c0_14, %c0_15] : memref<8x1xf32, #tpu.memory_space<vmem>>, vector<8x1xf32>
    %27 = arith.mulf %21, %26 : vector<8x1xf32>
    %28 = arith.extf %25 : vector<8x8xbf16> to vector<8x8xf32>
    %cst_16 = arith.constant dense<0.000000e+00> : vector<8xf32>
    %29 = vector.multi_reduction <add>, %28, %cst_16 [1] : vector<8x8xf32> to vector<8xf32>
    %30 = vector.shape_cast %29 : vector<8xf32> to vector<8x1xf32>
    %31 = arith.addf %27, %30 : vector<8x1xf32>
    %c0_17 = arith.constant 0 : index
    %c0_18 = arith.constant 0 : index
    %32 = vector.load %arg8[%c0_17, %c0_18] : memref<8x1xf32, #tpu.memory_space<vmem>>, vector<8x1xf32>
    tpu.vector_store %arg8[%c0_17, %c0_18], %31 {strides = array<i32>} : memref<8x1xf32, #tpu.memory_space<vmem>>, vector<8x1xf32>,
    %c0_19 = arith.constant 0 : index
    %c0_20 = arith.constant 0 : index
    %33 = vector.load %arg9[%c0_19, %c0_20] : memref<8x16xf32, #tpu.memory_space<vmem>>, vector<8x16xf32>
    %34 = vector.broadcast %21 : vector<8x1xf32> to vector<8x16xf32>
    %35 = arith.mulf %34, %33 : vector<8x16xf32>
    %cst_21 = arith.constant dense<0.000000e+00> : vector<8x16xf32>
    %36 = tpu.matmul %25, %14, %cst_21 {dimension_numbers = #tpu.dot_dimension_numbers<[1], [0], [0], [1], [0, 0, 1, 1], [], []>} : vector<8x8xbf16>, vector<8x16xbf16>, vector<8x16xf32> -> vector<8x16xf32>
    %37 = arith.addf %35, %36 : vector<8x16xf32>
    %c0_22 = arith.constant 0 : index
    %c0_23 = arith.constant 0 : index
    %38 = vector.load %arg9[%c0_22, %c0_23] : memref<8x16xf32, #tpu.memory_space<vmem>>, vector<8x16xf32>
    tpu.vector_store %arg9[%c0_22, %c0_23], %37 {strides = array<i32>} : memref<8x16xf32, #tpu.memory_space<vmem>>, vector<8x16xf32>,
    %c0_24 = arith.constant 0 : index
    %c0_25 = arith.constant 0 : index
    %39 = vector.load %arg7[%c0_24, %c0_25] : memref<8x1xf32, #tpu.memory_space<vmem>>, vector<8x1xf32>
    tpu.vector_store %arg7[%c0_24, %c0_25], %19 {strides = array<i32>} : memref<8x1xf32, #tpu.memory_space<vmem>>, vector<8x1xf32>,
    %c0_i32_26 = arith.constant 0 : i32
    %40 = arith.cmpi eq, %arg2, %c0_i32_26 : i32
    %41 = arith.extui %40 : i1 to i32
    %c0_i32_27 = arith.constant 0 : i32
    %42 = arith.cmpi ne, %41, %c0_i32_27 : i32
    scf.if %42 {
      %c0_28 = arith.constant 0 : index
      %c0_29 = arith.constant 0 : index
      %43 = vector.load %arg9[%c0_28, %c0_29] : memref<8x16xf32, #tpu.memory_space<vmem>>, vector<8x16xf32>
      %c0_30 = arith.constant 0 : index
      %c0_31 = arith.constant 0 : index
      %44 = vector.load %arg8[%c0_30, %c0_31] : memref<8x1xf32, #tpu.memory_space<vmem>>, vector<8x1xf32>
      %45 = vector.broadcast %44 : vector<8x1xf32> to vector<8x16xf32>
      %46 = arith.divf %43, %45 : vector<8x16xf32>
      %47 = vector.shape_cast %46 : vector<8x16xf32> to vector<1x8x16xf32>
      %c0_32 = arith.constant 0 : index
      %c0_33 = arith.constant 0 : index
      %c0_34 = arith.constant 0 : index
      %c0_35 = arith.constant 0 : index
      %48 = vector.load %arg6[%c0_32, %c0_33, %c0_34, %c0_35] : memref<1x1x8x16xf32, #tpu.memory_space<vmem>>, vector<1x1x8x16xf32>
      %49 = vector.shape_cast %48 : vector<1x1x8x16xf32> to vector<1x8x16xf32>
      %50 = vector.shape_cast %47 : vector<1x8x16xf32> to vector<1x1x8x16xf32>
      tpu.vector_store %arg6[%c0_32, %c0_33, %c0_34, %c0_35], %50 {strides = array<i32>} : memref<1x1x8x16xf32, #tpu.memory_space<vmem>>, vector<1x1x8x16xf32>,
    } else {
    }
    return
  }
  func.func @transform_0(%arg0: i32, %arg1: i32, %arg2: i32) -> (i32, i32, i32, i32) {
    %c0_i32 = arith.constant 0 : i32
    %c0_i32_0 = arith.constant 0 : i32
    %c0_i32_1 = arith.constant 0 : i32
    return %arg0, %c0_i32, %arg1, %c0_i32_0 : i32, i32, i32, i32
  }
  func.func @transform_1(%arg0: i32, %arg1: i32, %arg2: i32) -> (i32, i32, i32) {
    %c0_i32 = arith.constant 0 : i32
    %c0_i32_0 = arith.constant 0 : i32
    return %arg0, %arg2, %c0_i32 : i32, i32, i32
  }
  func.func @transform_2(%arg0: i32, %arg1: i32, %arg2: i32) -> (i32, i32, i32) {
    %c0_i32 = arith.constant 0 : i32
    %c0_i32_0 = arith.constant 0 : i32
    return %arg0, %arg2, %c0_i32 : i32, i32, i32
  }
  func.func @transform_3(%arg0: i32, %arg1: i32, %arg2: i32) -> (i32, i32, i32, i32) {
    %c0_i32 = arith.constant 0 : i32
    %c0_i32_0 = arith.constant 0 : i32
    %c0_i32_1 = arith.constant 0 : i32
    return %arg0, %c0_i32, %arg1, %c0_i32_0 : i32, i32, i32, i32
  }
}

</mosaic_0001>

<bundles_post_ra>
// kernel: tpu_custom_call.1
= control target key start
LH: loop header
LB: loop body
LE: loop exit
PB: predicated region body
PF: predicated region fallthrough
CT: control target
= control target key end

     0   :  { %s1193_s0 = inlined_call_operand.hbm [shape: f32[4,1,8,16], index: 0, kind: input, shape index: {}]   ;;  %s1194_s1 = inlined_call_operand.hbm [shape: f32[4,8,16], index: 1, kind: input, shape index: {}]   ;;  %s1195_s2 = inlined_call_operand.hbm [shape: f32[4,8,16], index: 2, kind: input, shape index: {}]   ;;  %s1196_s3 = inlined_call_operand.hbm [shape: f32[4,1,8,16], index: 3, kind: output, shape index: {}]  }
   0x1   :  { %1202 = sst [smem:[#allocation18_spill]] %s1194_s1 }
   0x2   :  { %8 = vsyncpa [#allocation6], 0 }
   0x3   :  { %10 = vsyncpa [#allocation6 + $0x1], 0 }
   0x4   :  { %11 = vsyncpa [#allocation9], 0 }
   0x5   :  { %13 = vsyncpa [#allocation9 + $0x1], 0 }
   0x6   :  { %14 = vsyncpa [#allocation7], 0 }
   0x7   :  { %16 = vsyncpa [#allocation7 + $0x1], 0  ;;  %s919_s12 = smov 0   ;;  %s921_s13 = smov 0  }
   0x8   :  { %s923_s14 = smov 0   ;;  %s925_s15 = smov 0  }
   0x9   :  { %s927_s16 = smov 0   ;;  %s929_s17 = smov 0  }
   0xa LB: > { %1203 = sst [smem:[#allocation15_spill]] %s885_s16  ;;  %s950_s18 = sadd.s32 4294967295, %s889_s17   ;;  %s889_s17 = sphi %s929_s17, %s22_s17   ;;  %s885_s16 = sphi %s927_s16, %s1223_s16   ;;  %s881_s15 = sphi %s925_s15, %s1222_s15   ;;  %s877_s14 = sphi %s923_s14, %s1226_s14   ;;  %s873_s13 = sphi %s921_s13, %s1225_s13   ;;  %s869_s12 = sphi %s919_s12, %s1224_s12  }
   0xb   : > { %s593_s19 = sadd.s32 4294967294, %s889_s17   ;;  %s41_s20 = sadd.s32 1, %s885_s16 }
   0xc   : > { %s50_s21 = sadd.s32 1, %s877_s14  ;;  %p43_p0 = scmp.ge.s32.totalorder %s41_s20, 4 }
   0xd   : > { %p57_p1 = scmp.ne.s32.totalorder %s877_s14, %s873_s13  ;;  %p58_p2 = scmp.eq.s32.totalorder %s889_s17, 0 }
   0xe   : > { %p63_p3 = scmp.ne.s32.totalorder %s873_s13, %s869_s12  ;;  %s1228_s20 = smov (%p43_p0, %s41_s20), 0 }
   0xf   : > { %1204 = sst [smem:[#allocation16_spill]] %s1228_s20  ;;  %p962_p4 = por %p58_p2, %p57_p1 }
  0x10   : > { %p64_p5 = scmp.eq.s32.totalorder %s950_s18, 0  ;;  %s45_s23 = ssub.s32 %s885_s16, %s1228_s20 }
  0x11   : > { %p145_p6 = scmp.eq.s32.totalorder %s950_s18, 3  ;;  %p48_p7 = scmp.eq.s32.totalorder %s45_s23, 0 }
  0x12   : > { %p970_p8 = por %p64_p5, %p63_p3  ;;  %p151_p10 = scmp.eq.s32.totalorder %s593_s19, 3 }
  0x13   : > { %p974_p9 = por %p145_p6, %p57_p1  ;;  %p651_p12 = scmp.lt.s32.totalorder %s889_s17, 4 }
  0x14   : > { %s1206_s24 = scalar_select %p970_p8, 1, 0 }
  0x15   : > { %s1207_s25 = scalar_select %p974_p9, 1, 0 }
  0x16   : > { %s979_s26 = scalar_select %p48_p7, %s877_s14, %s50_s21  }
  0x17   : > { %p981_p11 = por %p151_p10, %p63_p3  ;;  %s171_s28 = sand.u32 1, %s877_s14  }
  0x18   : > { %1208 = sst [smem:[#allocation17_spill]] %s979_s26  ;;  %s989_s29 = sshll.u32 %s171_s28, 3 }
  0x19   : > { %s1209_s27 = scalar_select %p981_p11, 1, 0 }
  0x1a   : > { %s992_s30 = sshll.u32 %s885_s16, 7  ;;  %p996_p13 = pnand %p651_p12, %p962_p4 }
  0x1b   : > { %s190_s5 = sand.u32 1, %s889_s17   ;;  %s1211_s1 = sld [smem:[#allocation18_spill]] }
  0x1c   : > { %s1210_s4 = scalar_select %p996_p13, 1, 0 }
  0x1d   : > { %s194_s9 = scalar_lea.vmem [#allocation8], %s989_s29  ;;  %s1012_s11 = scalar_lea.sflag [#allocation9], %s190_s5 }
  0x1e   : > { %s202_s10 = sshll.u32 %s194_s9, 4  ;;  %p1018_p3 = pneg %p996_p13  ;;  %s1009_s10 = int_to_ptr.vmem [resolvable:$true] %s202_s10 }
  0x21   : > { %s1005_s8 = scalar_lea.hbm %s1211_s1, %s992_s30  ;;  %s718_s6 = scalar_lea.hbm %s1211_s1, 512 }
  0x22   : > { %s713_s19 = scalar_lea.hbm %s1005_s8, 128  ;;  %p719_p6 = scmp.lt.u32.totalorder %s1005_s8, %s1211_s1 }
  0x23   : > { %p714_p2 = scmp.ne.s32.totalorder %s1005_s8, %s713_s19  ;;  %p720_p7 = scmp.lt.u32.totalorder %s718_s6, %s713_s19 }
  0x24   : > { %p722_p12 = scmp.lt.u32.totalorder %s713_s19, %s1005_s8 }
  0x25   : > { %p716_p4 = pnand %p1018_p3, %p714_p2  ;;  %p721_p10 = por %p720_p7, %p719_p6 }
  0x27   : > { %p717_p5 = pneg %p716_p4  ;;  %p723_p0 = por %p722_p12, %p721_p10 }
  0x29   : > { %p724_p1 = pnand %p723_p0, %p717_p5 }
  0x2b   : > { %727 = shalt.err (!%p724_p1)
}
  0x2c   : > { %s728_s5 = scalar_lea.vmem %s1009_s10, 128  ;;  %s891_s22 = smov [#allocation8]  }
  0x2d   : > { %p729_p2 = scmp.ne.s32.totalorder %s1009_s10, %s728_s5  ;;  %s733_s23 = sshll.u32 %s891_s22, 4  ;;  %s734_s23 = int_to_ptr.vmem [resolvable:$false] %s733_s23 }
  0x2e   : > { %s735_s7 = scalar_lea.vmem %s734_s23, 256  ;;  %p736_p9 = scmp.lt.s32.totalorder %s1009_s10, %s734_s23 }
  0x2f   : > { %p731_p4 = pnand %p729_p2, %p1018_p3  ;;  %p737_p8 = scmp.lt.s32.totalorder %s735_s7, %s728_s5 }
  0x31   : > { %p732_p11 = pneg %p731_p4  ;;  %p738_p6 = por %p737_p8, %p736_p9 }
  0x33   : > { %p739_p7 = pnand %p738_p6, %p732_p11 }
  0x35   : > { %742 = shalt.err (!%p739_p7)
}
  0x36   : > { %643 = dma.hbm_to_vmem [thread:$0]  (!%p996_p13), %s1005_s8, 128, %s1009_s10, %s1012_s11  }
  0x37   : > { %p1213_p0 = scmp.lt.s32.totalorder %s889_s17, 5  ;;  %p1214_p1 = scmp.ge.s32.totalorder %s889_s17, 1 }
  0x38   : > { %s1054_s5 = scalar_lea.hbm %s1193_s0, %s992_s30  ;;  %s175_s22 = scalar_lea.vmem [#allocation5], %s989_s29 }
  0x39   : > { %p1046_p5 = pnand %p1214_p1, %p1213_p0  ;;  %s183_s23 = sshll.u32 %s175_s22, 4  ;;  %s1057_s23 = int_to_ptr.vmem [resolvable:$true] %s183_s23 }
  0x3a   : > { %s1063_s7 = scalar_lea.hbm %s1195_s2, %s992_s30  ;;  %s172_s1 = scalar_lea.sflag [#allocation6], %s171_s28 }
  0x3b   : > { %s1215_s19 = scalar_select %p1046_p5, 1, 0 }
  0x3c   : > { %s743_s20 = scalar_lea.hbm %s1054_s5, 128  ;;  %s748_s16 = scalar_lea.hbm %s1193_s0, 512 }
  0x3d   : > { %p744_p8 = scmp.ne.s32.totalorder %s1054_s5, %s743_s20  ;;  %p749_p10 = scmp.lt.u32.totalorder %s1054_s5, %s1193_s0 }
  0x3e   : > { %p750_p12 = scmp.lt.u32.totalorder %s748_s16, %s743_s20  ;;  %p752_p4 = scmp.lt.u32.totalorder %s743_s20, %s1054_s5 }
  0x3f   : > { %p746_p9 = pnand %p744_p8, %p1018_p3 }
  0x40   : > { %p751_p2 = por %p750_p12, %p749_p10 }
  0x41   : > { %p747_p11 = pneg %p746_p9 }
  0x42   : > { %p753_p6 = por %p752_p4, %p751_p2 }
  0x44   : > { %p754_p7 = pnand %p753_p6, %p747_p11 }
  0x46   : > { %757 = shalt.err (!%p754_p7)
}
  0x47   : > { %s758_s28 = scalar_lea.vmem %s1057_s23, 128  ;;  %s892_s30 = smov [#allocation5]  }
  0x48   : > { %p759_p0 = scmp.ne.s32.totalorder %s1057_s23, %s758_s28  ;;  %s763_s8 = sshll.u32 %s892_s30, 4  ;;  %s764_s8 = int_to_ptr.vmem [resolvable:$false] %s763_s8 }
  0x49   : > { %s765_s26 = scalar_lea.vmem %s764_s8, 256  ;;  %p766_p9 = scmp.lt.s32.totalorder %s1057_s23, %s764_s8 }
  0x4a   : > { %p761_p1 = pnand %p759_p0, %p1018_p3  ;;  %p767_p5 = scmp.lt.s32.totalorder %s765_s26, %s758_s28 }
  0x4c   : > { %p762_p8 = pneg %p761_p1  ;;  %p768_p10 = por %p767_p5, %p766_p9 }
  0x4e   : > { %p769_p12 = pnand %p768_p10, %p762_p8 }
  0x50   : > { %772 = shalt.err (!%p769_p12)
}
  0x51   : > { %640 = dma.hbm_to_vmem [thread:$0]  (!%p996_p13), %s1054_s5, 128, %s1057_s23, %s172_s1  }
  0x52   : > { %s213_s16 = scalar_lea.vmem [#allocation10], %s989_s29  ;;  %s773_s10 = scalar_lea.hbm %s1063_s7, 128 }
  0x53   : > { %s221_s20 = sshll.u32 %s213_s16, 4  ;;  %p774_p11 = scmp.ne.s32.totalorder %s1063_s7, %s773_s10  ;;  %s222_s20 = int_to_ptr.vmem [resolvable:$true] %s221_s20 }
  0x54   : > { %s778_s22 = scalar_lea.hbm %s1195_s2, 512  ;;  %p779_p4 = scmp.lt.u32.totalorder %s1063_s7, %s1195_s2 }
  0x55   : > { %p776_p5 = pnand %p774_p11, %p1018_p3  ;;  %p780_p6 = scmp.lt.u32.totalorder %s778_s22, %s773_s10 }
  0x56   : > { %p782_p0 = scmp.lt.u32.totalorder %s773_s10, %s1063_s7 }
  0x57   : > { %p777_p2 = pneg %p776_p5  ;;  %p781_p7 = por %p780_p6, %p779_p4 }
  0x59   : > { %p783_p1 = por %p782_p0, %p781_p7 }
  0x5b   : > { %p784_p8 = pnand %p783_p1, %p777_p2 }
  0x5d   : > { %787 = shalt.err (!%p784_p8)
}
  0x5e   : > { %s788_s1 = scalar_lea.vmem %s222_s20, 128  ;;  %s893_s29 = smov [#allocation10]  }
  0x5f   : > { %p789_p9 = scmp.ne.s32.totalorder %s222_s20, %s788_s1  ;;  %s793_s5 = sshll.u32 %s893_s29, 4  ;;  %s794_s5 = int_to_ptr.vmem [resolvable:$false] %s793_s5 }
  0x60   : > { %s795_s23 = scalar_lea.vmem %s794_s5, 256  ;;  %p796_p11 = scmp.lt.s32.totalorder %s222_s20, %s794_s5 }
  0x61   : > { %p791_p10 = pnand %p789_p9, %p1018_p3  ;;  %p797_p5 = scmp.lt.s32.totalorder %s795_s23, %s788_s1 }
  0x63   : > { %p792_p12 = pneg %p791_p10  ;;  %p798_p13 = por %p797_p5, %p796_p11 }
  0x65   : > { %p799_p4 = pnand %p798_p13, %p792_p12 }
  0x67   : > { %802 = shalt.err (!%p799_p4)
}
  0x68   : > { %p1216_p6 = scmp.ne.s32.totalorder %s1210_s4, 0  ;;  %p1217_p2 = scmp.ne.s32.totalorder %s1215_s19, 0 }
  0x69   : > { %s1110_s21 = sand.u32 (!%p1217_p2), 1, %s873_s13   ;;  %p1218_p13 = scmp.ne.s32.totalorder (!%p1217_p2), %s1206_s24, 0 }
  0x6a   : > { %646 = dma.hbm_to_vmem [thread:$0]  (!%p1216_p6), %s1063_s7, 128, %s222_s20, %s1012_s11  }
  0x6b   : > { %230 = sbr.rel (%p1217_p2) target bundleno = 942 (0x3ae), region = 32  ;;  %s1113_s8 = sshll.u32 (!%p1217_p2), %s1110_s21, 3 }
  0x6c   : > { %s233_s26 = scalar_lea.sflag (!%p1217_p2), [#allocation6], %s1110_s21  ;;  %s236_s16 = scalar_lea.vmem (!%p1217_p2), [#allocation5], %s1113_s8 }
  0x72   : > { %856 = dma.done.wait (%p1218_p13), %s233_s26, 128  }
  0x73   : > { %858 = vsyncadd (%p1218_p13), %s233_s26, 4294967168  ;;  %s241_s4 = sand.u32 1, %s950_s18   ;;  %s245_s19 = scalar_lea.vmem [#allocation8], %s1113_s8 }
  0x74   : > { %s242_s11 = scalar_lea.sflag [#allocation9], %s241_s4 }
  0x75   : > { %860 = dma.done.wait (%p1218_p13), %s242_s11, 256  }
  0x76   : > { %862 = vsyncadd (%p1218_p13), %s242_s11, 4294967040  ;;  %vm295_vm0 = vcmask 130048   ;;  %v894_v0 = vmov 0.0   ;;  %vm895_vm1 = vmmov 0   ;;  %v300_v1 = vld [vmem:[%s245_s19] sm:$0xff]  ;;  %v297_v2 = vld [vmem:[%s236_s16] sm:$0xff] }
  0x77   : > { %617 = vmatprep.subr.bf16.mxu0 %v894_v0  ;;  %296 = vst.msk [vmem:[#allocation4] sm:$0xff] %vm295_vm0, %v894_v0  ;;  %619 = vmatprep.mubr.msk.bf16.mxu0 %vm895_vm1, %v894_v0  ;;  %v301_v3 = vpack.c.bf16 %v300_v1, %v300_v1  ;;  %v298_v5 = vmul.f32 0.25, %v297_v2  ;;  %vm292_vm2 = vcmask 7168   ;;  %v896_v7 = vmov -inf   ;;  %s254_s18 = scalar_lea.vmem [#allocation10], %s1113_s8  ;;  %s610_s24 = sshll.u32 %s881_s15, 7 }
  0x78   : > { %623 = vmatprep.subr.bf16.mxu1 %v894_v0  ;;  %625 = vmatprep.mubr.msk.bf16.mxu1 %vm895_vm1, %v894_v0  ;;  %293 = vst.msk [vmem:[#allocation2] sm:$0xff] %vm292_vm2, %v896_v7  ;;  %294 = vst.msk [vmem:[#allocation3] sm:$0xff] %vm292_vm2, %v894_v0  ;;  %vm352_vm3 = vcmask 64512   ;;  %v897_v13 = vmov 0   ;;  %v302_v18 = vld [vmem:[%s254_s18] sm:$0xff]  ;;  %vm389_vm4 = vcmask 1043456   ;;  %s1144_s9 = scalar_lea.hbm %s1196_s3, %s610_s24 }
  0x79   : > { %v309_v4 = vsel %vm295_vm0, %v301_v3, 0  ;;  %v299_v6 = vpack.c.bf16 %v298_v5, %v298_v5  ;;  %705 = vset.pattern.permute.xlu0 %v897_v13  ;;  %706 = vset.pattern.permute.xlu1 %v897_v13  ;;  %v303_v19 = vpack.c.bf16 %v302_v18, %v302_v18  ;;  %s286_s7 = scalar_lea.vmem [#allocation11], %s1113_s8  ;;  %s450_s22 = scalar_lea.sflag [#allocation7], %s1110_s21 }
  0x7a   : > { %618 = vmatpush3.bf16.xpose.msra.mxu0 %v309_v4  ;;  %s464_s20 = sshll.u32 %s286_s7, 4  ;;  %p1219_p7 = scmp.ne.s32.totalorder %s1207_s25, 0  ;;  %s1146_s20 = int_to_ptr.vmem [resolvable:$true] %s464_s20 }
  0x7b   : > { %v391_v20 = vsel %vm389_vm4, %v303_v19, 0  ;;  %s803_s28 = scalar_lea.vmem %s1146_s20, 128  ;;  %s898_s15 = smov [#allocation11]  }
  0x7c   : > { %624 = vmatpush3.bf16.msra.mxu1 %v391_v20  ;;  %p804_p3 = scmp.ne.s32.totalorder %s1146_s20, %s803_s28  ;;  %s807_s30 = sshll.u32 %s898_s15, 4  ;;  %s808_s30 = int_to_ptr.vmem [resolvable:$false] %s807_s30 }
  0x7d   : > { %s809_s1 = scalar_lea.vmem %s808_s30, 256  ;;  %p810_p8 = scmp.lt.s32.totalorder %s1146_s20, %s808_s30 }
  0x7e   : > { %v379_v35 = vld [vmem:[#allocation4] sm:$0xff]  ;;  %p805_p0 = pnand %p804_p3, %p1219_p7  ;;  %p811_p9 = scmp.lt.s32.totalorder %s809_s1, %s803_s28 }
  0x7f   : > { %v351_v14 = vld [vmem:[#allocation2] sm:$0xff]  ;;  %v370_v30 = vld [vmem:[#allocation3] sm:$0xff] }
  0x80   : > { %p806_p1 = pneg %p805_p0  ;;  %p812_p10 = por %p811_p9, %p810_p8 }
  0x81   : > { %620 = vmatmul.mubr.msk.bf16.vlgmr.msra.gmra.mrb[0].mxu0 %vm295_vm0, %v299_v6 }
  0x82   : > { %p813_p12 = pnand %p812_p10, %p806_p1 }
 0x154   : > { %v345_v8 = vpop.f32.mrb[0].mxu0 }
 0x155   : > { %v621_v9 = vpop.f32.mrb[1].mxu0  ;;  %v353_v10 = vsel %vm352_vm3, %v345_v8, -inf }
 0x156   : > { %354 = vmax.xlane.f32.xlu0 %v353_v10  ;;  %v348_v11 = vpop.f32.mrb[2].mxu0 }
 0x157   : > { %v622_v12 = vpop.f32.mrb[3].mxu0 }
 0x1e3   : > { %v355_v15 = vpop.xlane.xlu0 %354 }
 0x1e4   : > { %v356_v16 = vmax.f32 %v351_v14, %v355_v15 }
 0x1e6   : > { %v357_v17 = vsub.f32 %v351_v14, %v356_v16  ;;  %435 = vst.msk [vmem:[#allocation2] sm:$0xff] %vm292_vm2, %v356_v16  ;;  %362 = vperm.xlu0 %705, %v356_v16  }
 0x1e8   : > { %v358_v28 = vmul.f32 1.442695, %v357_v17 }
 0x265   : > { %v363_v21 = vpop.permute.xlu0 %362 }
 0x266   : > { %v365_v22 = vsub.f32 %v345_v8, %v363_v21 }
 0x268   : > { %v366_v23 = vpack.c.bf16 %v365_v22, %v365_v22 }
 0x26a   : > { %v368_v24 = vmul.bf16 1069105081, %v366_v23 }
 0x26c   : > { %707 = vpow.bf16 %v368_v24 }
 0x26d   : > { %709 = vpow2.f32 %v358_v28 }
 0x277   : > { %v708_v25 = vpop.eup %707 }
 0x278   : > { %626 = vmatmul.mubr.msk.bf16.vlgmr.msra.gmra.mrb[0].mxu1 %vm352_vm3, %v708_v25  ;;  %v372_v26 = vunpack.c.l.bf16 %v708_v25  ;;  %v710_v29 = vpop.eup %709 }
 0x279   : > { %v371_v31 = vmul.f32 %v710_v29, %v370_v30 }
 0x27a   : > { %v373_v27 = vsel %vm352_vm3, %v372_v26, 0.0 }
 0x27b   : > { %374 = vadd.xlane.f32.xlu1 %v373_v27 }
 0x28c   : > { %382 = vperm.xlu1 %706, %v710_v29  }
 0x308   : > { %v375_v32 = vpop.xlane.xlu1 %374 }
 0x309   : > { %v376_v33 = vadd.f32 %v375_v32, %v371_v31 }
 0x30b   : > { %378 = vst.msk [vmem:[#allocation3] sm:$0xff] %vm292_vm2, %v376_v33 }
 0x30c   : > { %v383_v36 = vpop.permute.xlu1 %382 }
 0x30d   : > { %v385_v37 = vmul.f32 %v383_v36, %v379_v35 }
 0x312   : > { %v440_v34 = vld [vmem:[#allocation3] sm:$0xff] }
 0x313   : > { %443 = vperm.xlu1 %706, %v440_v34  }
 0x34b   : > { %v427_v38 = vpop.f32.mrb[0].mxu1 }
 0x34c   : > { %v433_v39 = vadd.f32 %v427_v38, %v385_v37  ;;  %v627_v40 = vpop.f32.mrb[1].mxu1 }
 0x34d   : > { %v430_v41 = vpop.f32.mrb[2].mxu1 }
 0x34e   : > { %434 = vst.msk [vmem:[#allocation4] sm:$0xff] %vm295_vm0, %v433_v39  ;;  %v628_v42 = vpop.f32.mrb[3].mxu1 }
 0x355   : > { %v439_v45 = vld [vmem:[#allocation4] sm:$0xff] }
 0x392   : > { %v444_v43 = vpop.permute.xlu1 %443 }
 0x393   : > { %711 = vrcp.f32 %v444_v43 }
 0x39d   : > { %v712_v44 = vpop.eup %711 }
 0x39e   : > { %v447_v46 = vmul.f32 %v712_v44, %v439_v45 }
 0x3a0   : > { %448 = vst.msk [vmem:[%s286_s7] sm:$0xff] %vm295_vm0, %v447_v46 }
 0x3a1   : > { %816 = shalt.err (!%p813_p12)
}
 0x3a2   : > { %s817_s29 = scalar_lea.hbm %s1144_s9, 128  ;;  %s821_s21 = scalar_lea.hbm %s1196_s3, 512 }
 0x3a3   : > { %p818_p11 = scmp.ne.s32.totalorder %s1144_s9, %s817_s29  ;;  %p822_p6 = scmp.lt.u32.totalorder %s1144_s9, %s1196_s3 }
 0x3a4   : > { %p823_p2 = scmp.lt.u32.totalorder %s821_s21, %s817_s29  ;;  %p825_p3 = scmp.lt.u32.totalorder %s817_s29, %s1144_s9 }
 0x3a5   : > { %p819_p5 = pnand %p818_p11, %p1219_p7 }
 0x3a6   : > { %p824_p13 = por %p823_p2, %p822_p6 }
 0x3a7   : > { %p820_p4 = pneg %p819_p5 }
 0x3a8   : > { %p826_p0 = por %p825_p3, %p824_p13 }
 0x3aa   : > { %p827_p1 = pnand %p826_p0, %p820_p4 }
 0x3ac   : > { %830 = shalt.err (!%p827_p1)
}
 0x3ad   : > { %635 = dma.vmem_to_hbm [thread:$0]  (%p1219_p7), %s1146_s20, 128, %s1144_s9, %s450_s22  }
 0x3ae PF: > { %p652_p8 = scmp.ge.s32.totalorder %s889_s17, 2  ;;  %s476_s16 = sand.u32 1, %s869_s12  }
 0x3af   : > { %p1220_p9 = scmp.ne.s32.totalorder %s1209_s27, 0  ;;  %s477_s4 = scalar_lea.sflag [#allocation7], %s476_s16 }
 0x3b1   : > { %p648_p10 = pnand %p652_p8, %p1220_p9 }
 0x3b3   : > { %864 = dma.done.wait (!%p648_p10), %s477_s4, 128  }
 0x3b4   : > { %866 = vsyncadd (!%p648_p10), %s477_s4, 4294967168  ;;  %s22_s17 = sadd.s32 1, %s889_s17   ;;  %s1221_s25 = sld [smem:[#allocation17_spill]] }
 0x3b5   : > { %p19_p12 = scmp.ge.s32.totalorder %s22_s17, 6   ;;  %s1222_s15 = sld [smem:[#allocation15_spill]] }
 0x3b6   : > { %s1223_s16 = sld [smem:[#allocation16_spill]]  ;;  %s1224_s12 = smov %s873_s13 }
 0x3b7   : > { %s1225_s13 = smov %s877_s14  ;;  %21 = sbr.rel (!%p19_p12) target bundleno = 10 (0xa), region = 109 }
 0x3ba   : > { %s1226_s14 = smov %s1221_s25 }
 0x3be   :  { %482 = vsyncpa [#allocation6], 1 }
 0x3bf   :  { %484 = vsyncpa [#allocation6 + $0x1], 1 }
 0x3c0   :  { %485 = vsyncpa [#allocation9], 1 }
 0x3c1   :  { %487 = vsyncpa [#allocation9 + $0x1], 1 }
 0x3c2   :  { %488 = vsyncpa [#allocation7], 1 }
 0x3c3   :  { %490 = vsyncpa [#allocation7 + $0x1], 1 }

</bundles_post_ra>
